<compile_context>
chip_gen: v5e
topology: v5e:2x2
jax: 0.10.0
libtpu: 0.0.40
codegen_flags: <defaults>
</compile_context>

<pallas_src>
from functools import partial

import jax
import jax.numpy as jnp
from jax.experimental import pallas as pl
from jax.experimental.pallas import tpu as pltpu

LN_EPS = 1e-5  # PyTorch nn.LayerNorm default


def _qnet_kernel(x_ref, w1_ref, b1_ref, g_ref, beta_ref, w2_ref, b2_ref, o_ref):
    # ---- Linear(state_size -> H) ----
    x = x_ref[...]                                             # (TB, S)
    h = jnp.dot(x, w1_ref[...], preferred_element_type=jnp.float32)
    h = h + b1_ref[...]                                        # (TB, H) + (1, H)

    # ---- ReLU ----
    h = jnp.maximum(h, 0.0)

    # ---- LayerNorm over last dim (biased variance, like PyTorch, all f32) ----
    mean = jnp.mean(h, axis=-1, keepdims=True)                 # (TB, 1)   -> XLU
    centered = h - mean
    var = jnp.mean(centered * centered, axis=-1, keepdims=True)
    inv_std = jax.lax.rsqrt(var + LN_EPS)                      # EUP
    h = centered * inv_std * g_ref[...] + beta_ref[...]        # (TB, H)

    # ---- Dropout: identity (inference mode) ----

    # ---- Linear(H -> A), transposed output: (A, TB), batch on the lane axis ----
    out = jax.lax.dot_general(
        w2_ref[...], h,                                        # (H, A) x (TB, H)
        dimension_numbers=(((0,), (1,)), ((), ())),
        preferred_element_type=jnp.float32,
    )                                                          # (A, TB)
    o_ref[...] = (out + b2_ref[...]).astype(o_ref.dtype)       # + (A, 1) bias


@partial(jax.jit, static_argnames=("block_b",))
def qnetwork_forward(x, params, *, block_b=8192):
    """Fused MLP forward. x: (B, state_size) f32 -> (B, 3) f32."""
    w1, b1, gamma, beta, w2, b2 = params
    B, S = x.shape
    H = w1.shape[1]
    A = w2.shape[1]  # 3 actions

    # Batch tile selection (no jnp.pad of x):
    #  * B <= block_b: one block covering the whole batch (block dims == array dims,
    #    always legal regardless of alignment).
    #  * B  > block_b: TB = block_b (multiple of 128 -> legal lane dim of the (A, TB)
    #    output block and sublane-aligned x block); last input block may be partial,
    #    its garbage rows land in output columns that are sliced off below.
    if B <= block_b:
        TB = B
    else:
        assert block_b % 128 == 0, "block_b must be a multiple of 128"
        TB = block_b
    grid_b = pl.cdiv(B, TB)
    Bp = grid_b * TB

    out = pl.pallas_call(
        _qnet_kernel,
        out_shape=jax.ShapeDtypeStruct((A, Bp), jnp.float32),
        grid=(grid_b,),
        in_specs=[
            pl.BlockSpec((TB, S), lambda i: (i, 0)),   # x: tiled over batch
            pl.BlockSpec((S, H), lambda i: (0, 0)),    # w1: VMEM-resident
            pl.BlockSpec((1, H), lambda i: (0, 0)),    # b1
            pl.BlockSpec((1, H), lambda i: (0, 0)),    # LN gamma
            pl.BlockSpec((1, H), lambda i: (0, 0)),    # LN beta
            pl.BlockSpec((H, A), lambda i: (0, 0)),    # w2
            pl.BlockSpec((A, 1), lambda i: (0, 0)),    # b2 (column vector)
        ],
        out_specs=pl.BlockSpec((A, TB), lambda i: (0, i)),     # actions x batch
        compiler_params=pltpu.CompilerParams(
            dimension_semantics=("parallel",),   # shard batch tiles across v7x TCs
            vmem_limit_bytes=32 * 1024 * 1024,   # headroom over v5e's 16 MiB default
        ),
        cost_estimate=pl.CostEstimate(
            flops=2 * B * (S * H + H * A),
            transcendentals=B,  # one rsqrt per row
            bytes_accessed=4 * (B * S + S * H + 3 * H + H * A + A + A * Bp),
        ),
    )(x, w1, b1, gamma, beta, w2, b2)

    # Drop the (tiny) padded tail columns and return (B, A); fuses under jit.
    return out[:, :B].T


def init_params(key, state_size, hidden=64, n_actions=3):
    """Deterministic synthetic init (PyTorch-Linear-style uniform bounds),
    pre-shaped once for the kernel: weights (in, out); b1/gamma/beta (1, H); b2 (A, 1)."""
    k1, k2, k3, k4 = jax.random.split(key, 4)
    bound1 = 1.0 / jnp.sqrt(state_size)
    bound2 = 1.0 / jnp.sqrt(hidden)
    w1 = jax.random.uniform(k1, (state_size, hidden), jnp.float32, -bound1, bound1)
    b1 = jax.random.uniform(k2, (1, hidden), jnp.float32, -bound1, bound1)
    w2 = jax.random.uniform(k3, (hidden, n_actions), jnp.float32, -bound2, bound2)
    b2 = jax.random.uniform(k4, (n_actions, 1), jnp.float32, -bound2, bound2)
    gamma = jnp.ones((1, hidden), jnp.float32)   # LayerNorm weight init
    beta = jnp.zeros((1, hidden), jnp.float32)   # LayerNorm bias init
    return (w1, b1, gamma, beta, w2, b2)


def _reference_forward(x, params):
    """Pure-JAX reference of the PyTorch forward (eval mode)."""
    w1, b1, gamma, beta, w2, b2 = params
    h = x @ w1 + b1
    h = jnp.maximum(h, 0.0)
    mean = jnp.mean(h, axis=-1, keepdims=True)
    var = jnp.mean((h - mean) ** 2, axis=-1, keepdims=True)
    h = (h - mean) / jnp.sqrt(var + LN_EPS) * gamma + beta
    return h @ w2 + b2.reshape(1, -1)


if __name__ == "__main__":
    key = jax.random.PRNGKey(0)
    k_x, k_p = jax.random.split(key)

    batch, state_size = 8, 32  # small shapes consistent with the module
    x = jax.random.normal(k_x, (batch, state_size), jnp.float32)
    params = init_params(k_p, state_size)

    out = qnetwork_forward(x, params)
    jax.block_until_ready(out)

    ref = _reference_forward(x, params)
    assert out.shape == (batch, 3), out.shape
    assert jnp.allclose(out, ref, atol=1e-4, rtol=1e-4), "mismatch vs reference"

    # Multi-tile path with a ragged (partial) last input block: B=1000, TB=256 -> grid=4.
    big_x = jax.random.normal(k_x, (1000, state_size), jnp.float32)
    big_out = qnetwork_forward(big_x, params, block_b=256)
    jax.block_until_ready(big_out)
    big_ref = _reference_forward(big_x, params)
    assert big_out.shape == (1000, 3), big_out.shape
    assert jnp.allclose(big_out, big_ref, atol=1e-4, rtol=1e-4), "mismatch vs reference (big)"

    print("KERNEL_OK")
</pallas_src>

<mosaic_0001>
module attributes {stable_mosaic.version = 11 : i64} {
  func.func @_qnet_kernel(%arg0: i32, %arg1: memref<8x32xf32, #tpu.memory_space<vmem>>, %arg2: memref<32x64xf32, #tpu.memory_space<vmem>>, %arg3: memref<1x64xf32, #tpu.memory_space<vmem>>, %arg4: memref<1x64xf32, #tpu.memory_space<vmem>>, %arg5: memref<1x64xf32, #tpu.memory_space<vmem>>, %arg6: memref<64x3xf32, #tpu.memory_space<vmem>>, %arg7: memref<3x1xf32, #tpu.memory_space<vmem>>, %arg8: memref<3x8xf32, #tpu.memory_space<vmem>>) attributes {dimension_semantics = [#tpu.dimension_semantics<parallel>], iteration_bounds = array<i64: 1>, scalar_prefetch = 0 : i64, scratch_operands = 0 : i64, tpu.core_type = #tpu.core_type<tc>, window_params = [{transform_indices = @transform_0, window_bounds = array<i64: 8, 32>}, {pipeline_mode = #tpu.pipeline_mode<synchronous>, transform_indices = @transform_1, window_bounds = array<i64: 32, 64>}, {pipeline_mode = #tpu.pipeline_mode<synchronous>, transform_indices = @transform_2, window_bounds = array<i64: 1, 64>}, {pipeline_mode = #tpu.pipeline_mode<synchronous>, transform_indices = @transform_3, window_bounds = array<i64: 1, 64>}, {pipeline_mode = #tpu.pipeline_mode<synchronous>, transform_indices = @transform_4, window_bounds = array<i64: 1, 64>}, {pipeline_mode = #tpu.pipeline_mode<synchronous>, transform_indices = @transform_5, window_bounds = array<i64: 64, 3>}, {pipeline_mode = #tpu.pipeline_mode<synchronous>, transform_indices = @transform_6, window_bounds = array<i64: 3, 1>}, {transform_indices = @transform_7, window_bounds = array<i64: 3, 8>}]} {
    %c0 = arith.constant 0 : index
    %c0_0 = arith.constant 0 : index
    %0 = vector.load %arg1[%c0, %c0_0] : memref<8x32xf32, #tpu.memory_space<vmem>>, vector<8x32xf32>
    %c0_1 = arith.constant 0 : index
    %c0_2 = arith.constant 0 : index
    %1 = vector.load %arg2[%c0_1, %c0_2] : memref<32x64xf32, #tpu.memory_space<vmem>>, vector<32x64xf32>
    %cst = arith.constant dense<0.000000e+00> : vector<8x64xf32>
    %2 = tpu.matmul %0, %1, %cst {dimension_numbers = #tpu.dot_dimension_numbers<[1], [0], [0], [1], [0, 0, 1, 1], [], []>} : vector<8x32xf32>, vector<32x64xf32>, vector<8x64xf32> -> vector<8x64xf32>
    %c0_3 = arith.constant 0 : index
    %c0_4 = arith.constant 0 : index
    %3 = vector.load %arg3[%c0_3, %c0_4] : memref<1x64xf32, #tpu.memory_space<vmem>>, vector<1x64xf32>
    %4 = vector.broadcast %3 : vector<1x64xf32> to vector<8x64xf32>
    %5 = arith.addf %2, %4 : vector<8x64xf32>
    %cst_5 = arith.constant 0.000000e+00 : f32
    %6 = vector.broadcast %cst_5 : f32 to vector<8x64xf32>
    %7 = arith.maximumf %5, %6 : vector<8x64xf32>
    %cst_6 = arith.constant dense<0.000000e+00> : vector<8xf32>
    %8 = vector.multi_reduction <add>, %7, %cst_6 [1] : vector<8x64xf32> to vector<8xf32>
    %9 = vector.shape_cast %8 : vector<8xf32> to vector<8x1xf32>
    %cst_7 = arith.constant 6.400000e+01 : f32
    %10 = vector.broadcast %cst_7 : f32 to vector<8x1xf32>
    %11 = arith.divf %9, %10 : vector<8x1xf32>
    %12 = vector.broadcast %11 : vector<8x1xf32> to vector<8x64xf32>
    %13 = arith.subf %7, %12 : vector<8x64xf32>
    %14 = arith.mulf %13, %13 : vector<8x64xf32>
    %cst_8 = arith.constant dense<0.000000e+00> : vector<8xf32>
    %15 = vector.multi_reduction <add>, %14, %cst_8 [1] : vector<8x64xf32> to vector<8xf32>
    %16 = vector.shape_cast %15 : vector<8xf32> to vector<8x1xf32>
    %cst_9 = arith.constant 6.400000e+01 : f32
    %17 = vector.broadcast %cst_9 : f32 to vector<8x1xf32>
    %18 = arith.divf %16, %17 : vector<8x1xf32>
    %cst_10 = arith.constant 9.99999974E-6 : f32
    %19 = vector.broadcast %cst_10 : f32 to vector<8x1xf32>
    %20 = arith.addf %18, %19 : vector<8x1xf32>
    %21 = math.rsqrt %20 : vector<8x1xf32>
    %22 = vector.broadcast %21 : vector<8x1xf32> to vector<8x64xf32>
    %23 = arith.mulf %13, %22 : vector<8x64xf32>
    %c0_11 = arith.constant 0 : index
    %c0_12 = arith.constant 0 : index
    %24 = vector.load %arg4[%c0_11, %c0_12] : memref<1x64xf32, #tpu.memory_space<vmem>>, vector<1x64xf32>
    %25 = vector.broadcast %24 : vector<1x64xf32> to vector<8x64xf32>
    %26 = arith.mulf %23, %25 : vector<8x64xf32>
    %c0_13 = arith.constant 0 : index
    %c0_14 = arith.constant 0 : index
    %27 = vector.load %arg5[%c0_13, %c0_14] : memref<1x64xf32, #tpu.memory_space<vmem>>, vector<1x64xf32>
    %28 = vector.broadcast %27 : vector<1x64xf32> to vector<8x64xf32>
    %29 = arith.addf %26, %28 : vector<8x64xf32>
    %c0_15 = arith.constant 0 : index
    %c0_16 = arith.constant 0 : index
    %30 = vector.load %arg6[%c0_15, %c0_16] : memref<64x3xf32, #tpu.memory_space<vmem>>, vector<64x3xf32>
    %cst_17 = arith.constant dense<0.000000e+00> : vector<3x8xf32>
    %31 = tpu.matmul %30, %29, %cst_17 {dimension_numbers = #tpu.dot_dimension_numbers<[0], [1], [1], [0], [0, 1, 1, 0], [], []>} : vector<64x3xf32>, vector<8x64xf32>, vector<3x8xf32> -> vector<3x8xf32>
    %c0_18 = arith.constant 0 : index
    %c0_19 = arith.constant 0 : index
    %32 = vector.load %arg7[%c0_18, %c0_19] : memref<3x1xf32, #tpu.memory_space<vmem>>, vector<3x1xf32>
    %33 = vector.broadcast %32 : vector<3x1xf32> to vector<3x8xf32>
    %34 = arith.addf %31, %33 : vector<3x8xf32>
    %c0_20 = arith.constant 0 : index
    %c0_21 = arith.constant 0 : index
    %35 = vector.load %arg8[%c0_20, %c0_21] : memref<3x8xf32, #tpu.memory_space<vmem>>, vector<3x8xf32>
    tpu.vector_store %arg8[%c0_20, %c0_21], %34 {strides = array<i32>} : memref<3x8xf32, #tpu.memory_space<vmem>>, vector<3x8xf32>,
    return
  }
  func.func @transform_0(%arg0: i32) -> (i32, i32) {
    %c0_i32 = arith.constant 0 : i32
    %c0_i32_0 = arith.constant 0 : i32
    return %arg0, %c0_i32 : i32, i32
  }
  func.func @transform_1(%arg0: i32) -> (i32, i32) {
    %c0_i32 = arith.constant 0 : i32
    %c0_i32_0 = arith.constant 0 : i32
    %c0_i32_1 = arith.constant 0 : i32
    return %c0_i32, %c0_i32_0 : i32, i32
  }
  func.func @transform_2(%arg0: i32) -> (i32, i32) {
    %c0_i32 = arith.constant 0 : i32
    %c0_i32_0 = arith.constant 0 : i32
    %c0_i32_1 = arith.constant 0 : i32
    return %c0_i32, %c0_i32_0 : i32, i32
  }
  func.func @transform_3(%arg0: i32) -> (i32, i32) {
    %c0_i32 = arith.constant 0 : i32
    %c0_i32_0 = arith.constant 0 : i32
    %c0_i32_1 = arith.constant 0 : i32
    return %c0_i32, %c0_i32_0 : i32, i32
  }
  func.func @transform_4(%arg0: i32) -> (i32, i32) {
    %c0_i32 = arith.constant 0 : i32
    %c0_i32_0 = arith.constant 0 : i32
    %c0_i32_1 = arith.constant 0 : i32
    return %c0_i32, %c0_i32_0 : i32, i32
  }
  func.func @transform_5(%arg0: i32) -> (i32, i32) {
    %c0_i32 = arith.constant 0 : i32
    %c0_i32_0 = arith.constant 0 : i32
    %c0_i32_1 = arith.constant 0 : i32
    return %c0_i32, %c0_i32_0 : i32, i32
  }
  func.func @transform_6(%arg0: i32) -> (i32, i32) {
    %c0_i32 = arith.constant 0 : i32
    %c0_i32_0 = arith.constant 0 : i32
    %c0_i32_1 = arith.constant 0 : i32
    return %c0_i32, %c0_i32_0 : i32, i32
  }
  func.func @transform_7(%arg0: i32) -> (i32, i32) {
    %c0_i32 = arith.constant 0 : i32
    %c0_i32_0 = arith.constant 0 : i32
    return %c0_i32, %arg0 : i32, i32
  }
}

</mosaic_0001>

<bundles_post_ra>
// kernel: qnetwork_forward.1
= control target key start
LH: loop header
LB: loop body
LE: loop exit
PB: predicated region body
PF: predicated region fallthrough
CT: control target
= control target key end

     0   :  { %s334_s0 = inlined_call_operand.vmem [shape: f32[8,32], index: 0, kind: input, shape index: {}]   ;;  %s335_s1 = inlined_call_operand.vmem [shape: f32[32,64], index: 1, kind: input, shape index: {}]   ;;  %s336_s2 = inlined_call_operand.vmem [shape: f32[1,64], index: 2, kind: input, shape index: {}]   ;;  %s337_s3 = inlined_call_operand.vmem [shape: f32[1,64], index: 3, kind: input, shape index: {}]   ;;  %s338_s4 = inlined_call_operand.vmem [shape: f32[1,64], index: 4, kind: input, shape index: {}]   ;;  %s339_s5 = inlined_call_operand.vmem [shape: f32[64,3], index: 5, kind: input, shape index: {}]   ;;  %s340_s6 = inlined_call_operand.vmem [shape: f32[3,1], index: 6, kind: input, shape index: {}]   ;;  %s341_s7 = inlined_call_operand.hbm [shape: f32[3,8], index: 7, kind: output, shape index: {}]  }
   0x1   :  { %v31_v0 = vld [vmem:[%s335_s1 + $0x18] sm:$0xff]  ;;  %v30_v1 = vld [vmem:[%s335_s1 + $0x10] sm:$0xff]  ;;  %v29_v2 = vld [vmem:[%s335_s1 + $0x8] sm:$0xff] }
   0x2   :  { %52 = vmatpush.msra.mxu0 %v31_v0 }
   0x4   :  { %53 = vmatpush.msra.mxu0 %v30_v1 }
   0x5   :  { %12 = vsyncpa [#allocation3], 0  ;;  %v28_v3 = vld [vmem:[%s335_s1] sm:$0xff]  ;;  %vm36_vm0 = vcmask 261120   ;;  %v102_v6 = vld [vmem:[%s339_s5 + $0x8] sm:$0xff]  ;;  %vm61_vm1 = vcmask 523264  }
   0x6   :  { %54 = vmatpush.msra.mxu0 %v29_v2  ;;  %v27_v4 = vld [vmem:[%s334_s0] sm:$0xff]  ;;  %v103_v12 = vld [vmem:[%s339_s5 + $0x10] sm:$0xff]  ;;  %v233_v13 = vmov 64.0   ;;  %v104_v14 = vld [vmem:[%s339_s5 + $0x18] sm:$0xff]  ;;  %v234_v33 = vmov 0   ;;  %s235_s30 = smov [#allocation2]  }
   0x7   :  { %v101_v5 = vld [vmem:[%s339_s5] sm:$0xff]  ;;  %203 = vrcp.f32 %v233_v13  ;;  %v106_v20 = vld [vmem:[%s339_s5 + $0x28] sm:$0xff]  ;;  %v107_v25 = vld [vmem:[%s339_s5 + $0x30] sm:$0xff]  ;;  %198 = vset.pattern.permute.xlu2 %v234_v33  ;;  %199 = vset.pattern.permute.xlu0 %v234_v33  ;;  %s180_s8 = sshll.u32 %s235_s30, 4  ;;  %vm173_vm6 = vcmask 59392   ;;  %s181_s8 = int_to_ptr.vmem [resolvable:$true] %s180_s8 }
   0x8   :  { %55 = vmatpush.msra.mxu0 %v28_v3  ;;  %115 = vxpose.xlu1.b32.start [1/8] (short) (narrow) %v101_v5, 8  ;;  %v200_v7 = vld [vmem:[%s336_s2] ss:$0 sm:$0xff]  ;;  %v108_v29 = vld [vmem:[%s339_s5 + $0x38] sm:$0xff] }
   0x9   :  { %191 = vmatmul.msk.f32.vlgmr.msra.gmra.mxu0 %vm36_vm0, %v27_v4  ;;  %v105_v17 = vld [vmem:[%s339_s5 + $0x20] sm:$0xff] }
   0xa   :  { %v109_v31 = vld [vmem:[%s340_s6] sm:$0x7] }
   0xb   :  { %112 = vperm.xlu2 %198, %v109_v31   ;;  %v201_v41 = vld [vmem:[%s337_s3] ss:$0 sm:$0xff]  ;;  %s182_s3 = sshll.u32 %s341_s7, 4  ;;  %s183_s3 = int_to_ptr.hbm [resolvable:$true] %s182_s3 }
   0xc   :  { %v202_v44 = vld [vmem:[%s338_s4] ss:$0 sm:$0xff] }
   0xd   :  { %v204_v15 = vpop.eup %203 }
   0xe   :  { %v66_v16 = vmul.f32 64.0, %v204_v15  ;;  %vm70_vm2 = vweird.f32 %v204_v15 }
  0x10   :  { %116 = vxpose.xlu1.b32.cont [2/8] (short) (narrow) %v102_v6, 8  ;;  %v67_v18 = vsub.f32 1.0, %v66_v16 }
  0x12   :  { %v68_v19 = vmul.f32 %v204_v15, %v67_v18 }
  0x14   :  { %v69_v21 = vadd.f32 %v204_v15, %v68_v19 }
  0x16   :  { %v71_v22 = vsel %vm70_vm2, %v204_v15, %v69_v21 }
  0x18   :  { %117 = vxpose.xlu1.b32.cont [3/8] (short) (narrow) %v103_v12, 8 }
  0x20   :  { %118 = vxpose.xlu1.b32.cont [4/8] (short) (narrow) %v104_v14, 8 }
  0x28   :  { %119 = vxpose.xlu1.b32.cont [5/8] (short) (narrow) %v105_v17, 8 }
  0x30   :  { %120 = vxpose.xlu1.b32.cont [6/8] (short) (narrow) %v106_v20, 8 }
  0x38   :  { %121 = vxpose.xlu1.b32.cont [7/8] (short) (narrow) %v107_v25, 8 }
  0x40   :  { %122 = vxpose.xlu1.b32.end [8/8] (short) (narrow) %v108_v29, 8 }
  0x65   :  { %v113_v48 = vpop.permute.xlu2 %112 }
  0x86   :  { %v57_v8 = vpop.f32.mrf.mxu0 }
  0x87   :  { %v58_v9 = vadd.f32 %v200_v7, %v57_v8 }
  0x89   :  { %v60_v10 = vmax.f32 %v58_v9, 0.0 }
  0x8b   :  { %v62_v11 = vsel %vm61_vm1, %v60_v10, 0.0 }
  0x8c   :  { %63 = vadd.xlane.f32.xlu0 %v62_v11 }
  0xac   :  { %v131_v47 = vpop.trf.xlu1 }
  0xff   :  { %v64_v23 = vpop.xlane.xlu0 %63 }
 0x100   :  { %v72_v24 = vmul.f32 %v71_v22, %v64_v23 }
 0x102   :  { %v73_v26 = vsub.f32 %v60_v10, %v72_v24 }
 0x104   :  { %v74_v27 = vmul.f32 %v73_v26, %v73_v26 }
 0x106   :  { %v75_v28 = vsel %vm61_vm1, %v74_v27, 0.0 }
 0x107   :  { %76 = vadd.xlane.f32.xlu0 %v75_v28 }
 0x17a   :  { %v77_v30 = vpop.xlane.xlu0 %76 }
 0x17b   :  { %v78_v32 = vmul.f32 %v77_v30, %v71_v22 }
 0x17d   :  { %v79_v34 = vadd.f32 1e-05, %v78_v32 }
 0x17f   :  { %205 = vrsqrt.f32 %v79_v34  ;;  %vm86_vm4 = vweird.f32 %v79_v34 }
 0x185   :  { %v206_v35 = vpop.eup %205 }
 0x186   :  { %v81_v36 = vmul.f32 %v206_v35, %v79_v34  ;;  %vm87_vm3 = vweird.f32 %v206_v35 }
 0x187   :  { %vm88_vm5 = vmor %vm86_vm4, %vm87_vm3 }
 0x188   :  { %v82_v37 = vmul.f32 %v206_v35, %v81_v36 }
 0x18a   :  { %v83_v38 = vmul.f32 0.5, %v82_v37 }
 0x18c   :  { %v84_v39 = vsub.f32 1.5, %v83_v38 }
 0x18e   :  { %v85_v40 = vmul.f32 %v206_v35, %v84_v39 }
 0x190   :  { %v89_v42 = vsel %vm88_vm5, %v206_v35, %v85_v40 }
 0x191   :  { %v90_v43 = vmul.f32 %v89_v42, %v73_v26 }
 0x193   :  { %v95_v45 = vmul.f32 %v201_v41, %v90_v43 }
 0x195   :  { %v100_v46 = vadd.f32 %v202_v44, %v95_v45 }
 0x197   :  { %192 = vmatpush.xpose.msk.msra.mxu1 %vm61_vm1, %v100_v46 }
 0x19a   :  { %193 = vmatmul.msk.f32.vlgmr.msra.gmra.mxu1 %vm61_vm1, %v131_v47 }
 0x217   :  { %v170_v49 = vpop.f32.mrf.mxu1 }
 0x218   :  { %v171_v50 = vadd.f32 %v170_v49, %v113_v48 }
 0x21a   :  { %174 = vst.msk [vmem:[#allocation2] sm:$0x7] %vm173_vm6, %v171_v50 }
 0x21b   :  { %185 = dma.vmem_to_hbm [thread:$0]  %s181_s8, 64, %s183_s3, [#allocation3]  }
 0x21c   :  { %231 = dma.done.wait [#allocation3], 64  }
 0x21d   :  { %232 = vsyncadd [#allocation3], 4294967232 }
 0x21e   :  { %190 = vsyncpa [#allocation3], 1 }

</bundles_post_ra>
